<compile_context>
chip_gen: v5e
topology: v5e:2x2
jax: 0.10.0
libtpu: 0.0.40
codegen_flags: <defaults>
</compile_context>

<pallas_src>
import math

import jax
import jax.numpy as jnp
import numpy as np
from jax.experimental import pallas as pl
from jax.experimental.pallas import tpu as pltpu


# --------------------------------------------------------------------------
# Pallas kernel: nb images per grid step, full ResBlock fused.
# --------------------------------------------------------------------------
def _make_resblock_kernel(Nb, H, W, C, res_scale):
    f32, bf16 = jnp.float32, jnp.bfloat16
    WC = W * C
    MH = Nb * H
    R0 = 8                     # first data row in the padded plane (8-aligned)
    PAD = 8                    # zero halo rows above / below the data rows

    def stage(dst_ref, val_bf16):
        # dst_ref: (Nb, H + 2*R0, WC) bf16 VMEM plane; every row rewritten each
        # step, so there is no persistent-scratch hazard under "parallel".
        zero = jnp.zeros((Nb, PAD, WC), bf16)
        dst_ref[:, 0:PAD, :] = zero                      # top halo rows
        dst_ref[:, R0 + H:R0 + H + PAD, :] = zero        # bottom halo rows
        dst_ref[:, R0:R0 + H, :] = val_bf16              # aligned, lane-dense

    def conv(src_ref, w_ref):
        # src_ref: padded plane; w_ref: (3, WC, WC) bf16 dx-folded weights.
        acc = None
        for dy in range(3):
            r = R0 - 1 + dy
            slab = src_ref[:, r:r + H, :].reshape(MH, WC)        # (MH, WC) bf16
            part = jnp.dot(slab, w_ref[dy], preferred_element_type=f32)
            acc = part if acc is None else acc + part
        return acc                                               # (MH, WC) f32

    def kernel(x_ref, w1_ref, w2_ref, out_ref, xp, x1p):
        x = x_ref[...]                                           # (Nb, H, WC) f32
        stage(xp, x.astype(bf16))
        y1 = jnp.maximum(conv(xp, w1_ref), 0.0)                  # ReLU in f32
        stage(x1p, y1.astype(bf16).reshape(Nb, H, WC))
        y2 = conv(x1p, w2_ref)
        # Fused scaled residual with the un-rounded f32 block input.
        out_ref[...] = y2.reshape(Nb, H, WC) * res_scale + x

    return kernel


def _fold_dx_into_weights(w_hwio, W):
    """(3, 3, Cin, Cout) HWIO -> (3, W*Cin, W*Cout) block-banded weights.

    B[dy][p*Cin + ci, w*Cout + co] = w[dy, p - w + 1, ci, co] when
    0 <= p - w + 1 < 3, else 0.  Out-of-range horizontal taps simply have no
    band entry, which is exactly SAME zero padding along W.
    """
    KH, KW, Cin, Cout = w_hwio.shape
    sel = np.zeros((KW, W, W), np.float32)
    for dx in range(KW):
        for w in range(W):
            p = w + dx - 1
            if 0 <= p < W:
                sel[dx, p, w] = 1.0
    folded = jnp.einsum('yxio,xpw->ypiwo', w_hwio, jnp.asarray(sel))
    return folded.reshape(KH, W * Cin, W * Cout)


def res_block_nhwc(x, w1, w2, *, res_scale=1.0, nb=None):
    """x: (N, H, W, C) f32; w1, w2: (3, 3, C, C) f32 HWIO (bias-free convs)."""
    N, H, W, C = x.shape
    WC = W * C
    if nb is None:
        nb = 1                  # >= 2 grid steps whenever N >= 2 (v7x dual TC)
    assert N % nb == 0, (N, nb)

    kernel = _make_resblock_kernel(nb, H, W, C, float(res_scale))
    w1f = _fold_dx_into_weights(w1, W).astype(jnp.bfloat16)
    w2f = _fold_dx_into_weights(w2, W).astype(jnp.bfloat16)
    x_flat = x.reshape(N, H, WC)                       # lane-dense (N, H, W*C)

    io_spec = pl.BlockSpec((nb, H, WC), lambda n: (n, 0, 0))
    w_spec = pl.BlockSpec((3, WC, WC), lambda n: (0, 0, 0))

    # VMEM budget: 2 bf16 padded planes + double-buffered f32 in/out blocks
    # + the two folded weight tensors, plus headroom.  Capped at v7x's 64 MiB.
    plane_bytes = nb * (H + 16) * WC * 2
    io_bytes = 2 * 2 * nb * H * WC * 4
    w_bytes = 2 * 3 * WC * WC * 2
    vmem_limit = int(min(max(2 * plane_bytes + io_bytes + w_bytes + (4 << 20),
                             16 << 20), 64 << 20))

    flops = 2 * 3 * 2 * N * H * WC * WC                # 2 convs * 3 dots each
    bytes_accessed = 2 * N * H * WC * 4 + w_bytes

    y = pl.pallas_call(
        kernel,
        out_shape=jax.ShapeDtypeStruct((N, H, WC), jnp.float32),
        grid=(N // nb,),
        in_specs=[io_spec, w_spec, w_spec],
        out_specs=io_spec,
        scratch_shapes=[
            pltpu.VMEM((nb, H + 16, WC), jnp.bfloat16),   # padded x plane
            pltpu.VMEM((nb, H + 16, WC), jnp.bfloat16),   # padded relu(conv1)
        ],
        compiler_params=pltpu.CompilerParams(
            dimension_semantics=("parallel",),
            vmem_limit_bytes=vmem_limit),
        cost_estimate=pl.CostEstimate(
            flops=flops, transcendentals=0, bytes_accessed=bytes_accessed),
    )(x_flat, w1f, w2f)
    return y.reshape(N, H, W, C)


def resblock_forward(x_nchw, w1, w2, res_scale=1.0):
    """PyTorch-layout entry point: x (N, C, H, W) -> (N, C, H, W)."""
    x = jnp.transpose(x_nchw, (0, 2, 3, 1))             # NCHW -> NHWC
    y = res_block_nhwc(x, w1, w2, res_scale=res_scale)
    return jnp.transpose(y, (0, 3, 1, 2))               # NHWC -> NCHW


# --------------------------------------------------------------------------
# Pure-JAX reference (high precision) for the correctness check.
# --------------------------------------------------------------------------
def _conv_ref(x, w):
    return jax.lax.conv_general_dilated(
        x, w, (1, 1), 'SAME',
        dimension_numbers=('NHWC', 'HWIO', 'NHWC'),
        precision=jax.lax.Precision.HIGHEST)


def resblock_ref(x_nchw, w1, w2, res_scale=1.0):
    x = jnp.transpose(x_nchw, (0, 2, 3, 1))
    y1 = jnp.maximum(_conv_ref(x, w1), 0.0)
    y2 = _conv_ref(y1, w2)
    return jnp.transpose(y2 * res_scale + x, (0, 3, 1, 2))


# --------------------------------------------------------------------------
if __name__ == "__main__":
    N, C, H, W = 2, 8, 16, 16                 # n_feats = 8 -> W*C = 128 lanes
    key = jax.random.PRNGKey(0)
    kx, k1, k2 = jax.random.split(key, 3)
    x = jax.random.normal(kx, (N, C, H, W), jnp.float32)   # NCHW, like PyTorch

    # PyTorch Conv2d default init range: U(-1/sqrt(fan_in), 1/sqrt(fan_in)).
    bound = 1.0 / math.sqrt(C * 9)
    w1 = jax.random.uniform(k1, (3, 3, C, C), jnp.float32, -bound, bound)
    w2 = jax.random.uniform(k2, (3, 3, C, C), jnp.float32, -bound, bound)

    fwd = jax.jit(lambda xx: resblock_forward(xx, w1, w2, res_scale=1.0))
    y = jax.block_until_ready(fwd(x))

    y_ref = jax.block_until_ready(resblock_ref(x, w1, w2, 1.0))
    err = float(jnp.max(jnp.abs(y - y_ref)))
    assert y.shape == x.shape, (y.shape, x.shape)
    assert err < 5e-2, f"max abs err too large: {err}"
    print("KERNEL_OK")
</pallas_src>

<mosaic_0001>
module attributes {stable_mosaic.version = 11 : i64} {
  func.func @kernel(%arg0: i32, %arg1: memref<1x16x128xf32, #tpu.memory_space<vmem>>, %arg2: memref<3x128x128xbf16, #tpu.memory_space<vmem>>, %arg3: memref<3x128x128xbf16, #tpu.memory_space<vmem>>, %arg4: memref<1x16x128xf32, #tpu.memory_space<vmem>>, %arg5: memref<1x32x128xbf16, #tpu.memory_space<vmem>>, %arg6: memref<1x32x128xbf16, #tpu.memory_space<vmem>>) attributes {dimension_semantics = [#tpu.dimension_semantics<parallel>], iteration_bounds = array<i64: 2>, scalar_prefetch = 0 : i64, scratch_operands = 2 : i64, tpu.core_type = #tpu.core_type<tc>, window_params = [{transform_indices = @transform_0, window_bounds = array<i64: 1, 16, 128>}, {pipeline_mode = #tpu.pipeline_mode<synchronous>, transform_indices = @transform_1, window_bounds = array<i64: 3, 128, 128>}, {pipeline_mode = #tpu.pipeline_mode<synchronous>, transform_indices = @transform_2, window_bounds = array<i64: 3, 128, 128>}, {transform_indices = @transform_3, window_bounds = array<i64: 1, 16, 128>}]} {
    %c0 = arith.constant 0 : index
    %c0_0 = arith.constant 0 : index
    %c0_1 = arith.constant 0 : index
    %0 = vector.load %arg1[%c0, %c0_0, %c0_1] : memref<1x16x128xf32, #tpu.memory_space<vmem>>, vector<1x16x128xf32>
    %1 = arith.truncf %0 : vector<1x16x128xf32> to vector<1x16x128xbf16>
    %cst = arith.constant 0.000000e+00 : bf16
    %2 = vector.broadcast %cst : bf16 to vector<1x8x128xbf16>
    %c0_2 = arith.constant 0 : index
    %c0_3 = arith.constant 0 : index
    %c0_4 = arith.constant 0 : index
    %3 = vector.load %arg5[%c0_2, %c0_3, %c0_4] : memref<1x32x128xbf16, #tpu.memory_space<vmem>>, vector<1x8x128xbf16>
    tpu.vector_store %arg5[%c0_2, %c0_3, %c0_4], %2 {strides = array<i32>} : memref<1x32x128xbf16, #tpu.memory_space<vmem>>, vector<1x8x128xbf16>,
    %c0_5 = arith.constant 0 : index
    %c24 = arith.constant 24 : index
    %c0_6 = arith.constant 0 : index
    %4 = vector.load %arg5[%c0_5, %c24, %c0_6] : memref<1x32x128xbf16, #tpu.memory_space<vmem>>, vector<1x8x128xbf16>
    tpu.vector_store %arg5[%c0_5, %c24, %c0_6], %2 {strides = array<i32>} : memref<1x32x128xbf16, #tpu.memory_space<vmem>>, vector<1x8x128xbf16>,
    %c0_7 = arith.constant 0 : index
    %c8 = arith.constant 8 : index
    %c0_8 = arith.constant 0 : index
    %5 = vector.load %arg5[%c0_7, %c8, %c0_8] : memref<1x32x128xbf16, #tpu.memory_space<vmem>>, vector<1x16x128xbf16>
    tpu.vector_store %arg5[%c0_7, %c8, %c0_8], %1 {strides = array<i32>} : memref<1x32x128xbf16, #tpu.memory_space<vmem>>, vector<1x16x128xbf16>,
    %c0_9 = arith.constant 0 : index
    %c7 = arith.constant 7 : index
    %c0_10 = arith.constant 0 : index
    %6 = vector.load %arg5[%c0_9, %c7, %c0_10] : memref<1x32x128xbf16, #tpu.memory_space<vmem>>, vector<1x16x128xbf16>
    %7 = vector.shape_cast %6 : vector<1x16x128xbf16> to vector<16x128xbf16>
    %c0_11 = arith.constant 0 : index
    %c0_12 = arith.constant 0 : index
    %c0_13 = arith.constant 0 : index
    %8 = vector.load %arg2[%c0_11, %c0_12, %c0_13] : memref<3x128x128xbf16, #tpu.memory_space<vmem>>, vector<1x128x128xbf16>
    %9 = vector.shape_cast %8 : vector<1x128x128xbf16> to vector<128x128xbf16>
    %cst_14 = arith.constant dense<0.000000e+00> : vector<16x128xf32>
    %10 = tpu.matmul %7, %9, %cst_14 {dimension_numbers = #tpu.dot_dimension_numbers<[1], [0], [0], [1], [0, 0, 1, 1], [], []>} : vector<16x128xbf16>, vector<128x128xbf16>, vector<16x128xf32> -> vector<16x128xf32>
    %c0_15 = arith.constant 0 : index
    %c8_16 = arith.constant 8 : index
    %c0_17 = arith.constant 0 : index
    %11 = vector.load %arg5[%c0_15, %c8_16, %c0_17] : memref<1x32x128xbf16, #tpu.memory_space<vmem>>, vector<1x16x128xbf16>
    %12 = vector.shape_cast %11 : vector<1x16x128xbf16> to vector<16x128xbf16>
    %c1 = arith.constant 1 : index
    %c0_18 = arith.constant 0 : index
    %c0_19 = arith.constant 0 : index
    %13 = vector.load %arg2[%c1, %c0_18, %c0_19] : memref<3x128x128xbf16, #tpu.memory_space<vmem>>, vector<1x128x128xbf16>
    %14 = vector.shape_cast %13 : vector<1x128x128xbf16> to vector<128x128xbf16>
    %cst_20 = arith.constant dense<0.000000e+00> : vector<16x128xf32>
    %15 = tpu.matmul %12, %14, %cst_20 {dimension_numbers = #tpu.dot_dimension_numbers<[1], [0], [0], [1], [0, 0, 1, 1], [], []>} : vector<16x128xbf16>, vector<128x128xbf16>, vector<16x128xf32> -> vector<16x128xf32>
    %16 = arith.addf %10, %15 : vector<16x128xf32>
    %c0_21 = arith.constant 0 : index
    %c9 = arith.constant 9 : index
    %c0_22 = arith.constant 0 : index
    %17 = vector.load %arg5[%c0_21, %c9, %c0_22] : memref<1x32x128xbf16, #tpu.memory_space<vmem>>, vector<1x16x128xbf16>
    %18 = vector.shape_cast %17 : vector<1x16x128xbf16> to vector<16x128xbf16>
    %c2 = arith.constant 2 : index
    %c0_23 = arith.constant 0 : index
    %c0_24 = arith.constant 0 : index
    %19 = vector.load %arg2[%c2, %c0_23, %c0_24] : memref<3x128x128xbf16, #tpu.memory_space<vmem>>, vector<1x128x128xbf16>
    %20 = vector.shape_cast %19 : vector<1x128x128xbf16> to vector<128x128xbf16>
    %cst_25 = arith.constant dense<0.000000e+00> : vector<16x128xf32>
    %21 = tpu.matmul %18, %20, %cst_25 {dimension_numbers = #tpu.dot_dimension_numbers<[1], [0], [0], [1], [0, 0, 1, 1], [], []>} : vector<16x128xbf16>, vector<128x128xbf16>, vector<16x128xf32> -> vector<16x128xf32>
    %22 = arith.addf %16, %21 : vector<16x128xf32>
    %cst_26 = arith.constant 0.000000e+00 : f32
    %23 = vector.broadcast %cst_26 : f32 to vector<16x128xf32>
    %24 = arith.maximumf %22, %23 : vector<16x128xf32>
    %25 = arith.truncf %24 : vector<16x128xf32> to vector<16x128xbf16>
    %26 = vector.shape_cast %25 : vector<16x128xbf16> to vector<1x16x128xbf16>
    %cst_27 = arith.constant 0.000000e+00 : bf16
    %27 = vector.broadcast %cst_27 : bf16 to vector<1x8x128xbf16>
    %c0_28 = arith.constant 0 : index
    %c0_29 = arith.constant 0 : index
    %c0_30 = arith.constant 0 : index
    %28 = vector.load %arg6[%c0_28, %c0_29, %c0_30] : memref<1x32x128xbf16, #tpu.memory_space<vmem>>, vector<1x8x128xbf16>
    tpu.vector_store %arg6[%c0_28, %c0_29, %c0_30], %27 {strides = array<i32>} : memref<1x32x128xbf16, #tpu.memory_space<vmem>>, vector<1x8x128xbf16>,
    %c0_31 = arith.constant 0 : index
    %c24_32 = arith.constant 24 : index
    %c0_33 = arith.constant 0 : index
    %29 = vector.load %arg6[%c0_31, %c24_32, %c0_33] : memref<1x32x128xbf16, #tpu.memory_space<vmem>>, vector<1x8x128xbf16>
    tpu.vector_store %arg6[%c0_31, %c24_32, %c0_33], %27 {strides = array<i32>} : memref<1x32x128xbf16, #tpu.memory_space<vmem>>, vector<1x8x128xbf16>,
    %c0_34 = arith.constant 0 : index
    %c8_35 = arith.constant 8 : index
    %c0_36 = arith.constant 0 : index
    %30 = vector.load %arg6[%c0_34, %c8_35, %c0_36] : memref<1x32x128xbf16, #tpu.memory_space<vmem>>, vector<1x16x128xbf16>
    tpu.vector_store %arg6[%c0_34, %c8_35, %c0_36], %26 {strides = array<i32>} : memref<1x32x128xbf16, #tpu.memory_space<vmem>>, vector<1x16x128xbf16>,
    %c0_37 = arith.constant 0 : index
    %c7_38 = arith.constant 7 : index
    %c0_39 = arith.constant 0 : index
    %31 = vector.load %arg6[%c0_37, %c7_38, %c0_39] : memref<1x32x128xbf16, #tpu.memory_space<vmem>>, vector<1x16x128xbf16>
    %32 = vector.shape_cast %31 : vector<1x16x128xbf16> to vector<16x128xbf16>
    %c0_40 = arith.constant 0 : index
    %c0_41 = arith.constant 0 : index
    %c0_42 = arith.constant 0 : index
    %33 = vector.load %arg3[%c0_40, %c0_41, %c0_42] : memref<3x128x128xbf16, #tpu.memory_space<vmem>>, vector<1x128x128xbf16>
    %34 = vector.shape_cast %33 : vector<1x128x128xbf16> to vector<128x128xbf16>
    %cst_43 = arith.constant dense<0.000000e+00> : vector<16x128xf32>
    %35 = tpu.matmul %32, %34, %cst_43 {dimension_numbers = #tpu.dot_dimension_numbers<[1], [0], [0], [1], [0, 0, 1, 1], [], []>} : vector<16x128xbf16>, vector<128x128xbf16>, vector<16x128xf32> -> vector<16x128xf32>
    %c0_44 = arith.constant 0 : index
    %c8_45 = arith.constant 8 : index
    %c0_46 = arith.constant 0 : index
    %36 = vector.load %arg6[%c0_44, %c8_45, %c0_46] : memref<1x32x128xbf16, #tpu.memory_space<vmem>>, vector<1x16x128xbf16>
    %37 = vector.shape_cast %36 : vector<1x16x128xbf16> to vector<16x128xbf16>
    %c1_47 = arith.constant 1 : index
    %c0_48 = arith.constant 0 : index
    %c0_49 = arith.constant 0 : index
    %38 = vector.load %arg3[%c1_47, %c0_48, %c0_49] : memref<3x128x128xbf16, #tpu.memory_space<vmem>>, vector<1x128x128xbf16>
    %39 = vector.shape_cast %38 : vector<1x128x128xbf16> to vector<128x128xbf16>
    %cst_50 = arith.constant dense<0.000000e+00> : vector<16x128xf32>
    %40 = tpu.matmul %37, %39, %cst_50 {dimension_numbers = #tpu.dot_dimension_numbers<[1], [0], [0], [1], [0, 0, 1, 1], [], []>} : vector<16x128xbf16>, vector<128x128xbf16>, vector<16x128xf32> -> vector<16x128xf32>
    %41 = arith.addf %35, %40 : vector<16x128xf32>
    %c0_51 = arith.constant 0 : index
    %c9_52 = arith.constant 9 : index
    %c0_53 = arith.constant 0 : index
    %42 = vector.load %arg6[%c0_51, %c9_52, %c0_53] : memref<1x32x128xbf16, #tpu.memory_space<vmem>>, vector<1x16x128xbf16>
    %43 = vector.shape_cast %42 : vector<1x16x128xbf16> to vector<16x128xbf16>
    %c2_54 = arith.constant 2 : index
    %c0_55 = arith.constant 0 : index
    %c0_56 = arith.constant 0 : index
    %44 = vector.load %arg3[%c2_54, %c0_55, %c0_56] : memref<3x128x128xbf16, #tpu.memory_space<vmem>>, vector<1x128x128xbf16>
    %45 = vector.shape_cast %44 : vector<1x128x128xbf16> to vector<128x128xbf16>
    %cst_57 = arith.constant dense<0.000000e+00> : vector<16x128xf32>
    %46 = tpu.matmul %43, %45, %cst_57 {dimension_numbers = #tpu.dot_dimension_numbers<[1], [0], [0], [1], [0, 0, 1, 1], [], []>} : vector<16x128xbf16>, vector<128x128xbf16>, vector<16x128xf32> -> vector<16x128xf32>
    %47 = arith.addf %41, %46 : vector<16x128xf32>
    %48 = vector.shape_cast %47 : vector<16x128xf32> to vector<1x16x128xf32>
    %cst_58 = arith.constant 1.000000e+00 : f32
    %49 = vector.broadcast %cst_58 : f32 to vector<1x16x128xf32>
    %50 = arith.mulf %48, %49 : vector<1x16x128xf32>
    %51 = arith.addf %50, %0 : vector<1x16x128xf32>
    %c0_59 = arith.constant 0 : index
    %c0_60 = arith.constant 0 : index
    %c0_61 = arith.constant 0 : index
    %52 = vector.load %arg4[%c0_59, %c0_60, %c0_61] : memref<1x16x128xf32, #tpu.memory_space<vmem>>, vector<1x16x128xf32>
    tpu.vector_store %arg4[%c0_59, %c0_60, %c0_61], %51 {strides = array<i32>} : memref<1x16x128xf32, #tpu.memory_space<vmem>>, vector<1x16x128xf32>,
    return
  }
  func.func @transform_0(%arg0: i32) -> (i32, i32, i32) {
    %c0_i32 = arith.constant 0 : i32
    %c0_i32_0 = arith.constant 0 : i32
    %c0_i32_1 = arith.constant 0 : i32
    return %arg0, %c0_i32, %c0_i32_0 : i32, i32, i32
  }
  func.func @transform_1(%arg0: i32) -> (i32, i32, i32) {
    %c0_i32 = arith.constant 0 : i32
    %c0_i32_0 = arith.constant 0 : i32
    %c0_i32_1 = arith.constant 0 : i32
    %c0_i32_2 = arith.constant 0 : i32
    return %c0_i32, %c0_i32_0, %c0_i32_1 : i32, i32, i32
  }
  func.func @transform_2(%arg0: i32) -> (i32, i32, i32) {
    %c0_i32 = arith.constant 0 : i32
    %c0_i32_0 = arith.constant 0 : i32
    %c0_i32_1 = arith.constant 0 : i32
    %c0_i32_2 = arith.constant 0 : i32
    return %c0_i32, %c0_i32_0, %c0_i32_1 : i32, i32, i32
  }
  func.func @transform_3(%arg0: i32) -> (i32, i32, i32) {
    %c0_i32 = arith.constant 0 : i32
    %c0_i32_0 = arith.constant 0 : i32
    %c0_i32_1 = arith.constant 0 : i32
    return %arg0, %c0_i32, %c0_i32_0 : i32, i32, i32
  }
}

</mosaic_0001>

<bundles_post_ra>
// kernel: _lambda_.1
= control target key start
LH: loop header
LB: loop body
LE: loop exit
PB: predicated region body
PF: predicated region fallthrough
CT: control target
= control target key end

     0   :  { %s1210_s12 = smov 0   ;;  %s1392_s0 = inlined_call_operand.vmem [shape: f32[2,16,128], index: 0, kind: input, shape index: {}]   ;;  %s1393_s1 = inlined_call_operand.vmem [shape: bf16[3,128,128], index: 1, kind: input, shape index: {}]   ;;  %s1394_s2 = inlined_call_operand.vmem [shape: bf16[3,128,128], index: 2, kind: input, shape index: {}]   ;;  %s1395_s3 = inlined_call_operand.vmem [shape: f32[2,16,128], index: 3, kind: output, shape index: {}]  }
   0x1 LB: > { %s835_s13 = sadd.s32 4294967295, %s1187_s12   ;;  %p839_p0 = scmp.ge.s32.totalorder %s1187_s12, 1  ;;  %s1187_s12 = sphi %s1210_s12, %s13_s12  }
   0x2   : > { %p137_p1 = scmp.lt.s32.totalorder %s1187_s12, 3 }
   0x4   : > { %p138_p2 = pnand %p839_p0, %p137_p1 }
   0x5   : > { %p161_p3 = scmp.lt.s32.totalorder (!%p138_p2), %s835_s13, 1 }
   0x6   : > { %141 = sbr.rel (%p138_p2) target bundleno = 351 (0x15f), region = 32 }
   0xb   : > { %v1127_v0 = vld [vmem:[%s1393_s1 + $0x78] sm:$0xff]  ;;  %v1189_v3 = vmov 0   ;;  %v1126_v4 = vld [vmem:[%s1393_s1 + $0x70] sm:$0xff]  ;;  %s1397_s13 = smov (!%p161_p3, %s835_s13), 1  ;;  %v1125_v7 = vld [vmem:[%s1393_s1 + $0x68] sm:$0xff] }
   0xc   : > { %v1119_v1 = vld [vmem:[%s1393_s1 + $0x38] sm:$0xff]  ;;  %176 = vst [vmem:[#allocation2] sm:$0xf] %v1189_v3  ;;  %270 = vmatpush.bf16.msra.mxu0 %v1127_v0  ;;  %v1118_v5 = vld [vmem:[%s1393_s1 + $0x30] sm:$0xff]  ;;  %s1110_s26 = sshll.u32 %s1397_s13, 4  ;;  %v1117_v8 = vld [vmem:[%s1393_s1 + $0x28] sm:$0xff] }
   0xd   : > { %v1136_v2 = vld [vmem:[%s1393_s1 + $0xb8] sm:$0xff]  ;;  %355 = vmatpush.bf16.msra.mxu1 %v1119_v1  ;;  %177 = vst [vmem:[#allocation2 + $0xc] sm:$0xf] %v1189_v3  ;;  %v1135_v6 = vld [vmem:[%s1393_s1 + $0xb0] sm:$0xff]  ;;  %s165_s29 = scalar_lea.vmem %s1392_s0, %s1110_s26  ;;  %v1134_v9 = vld [vmem:[%s1393_s1 + $0xa8] sm:$0xff]  ;;  %s170_s19 = scalar_lea.vmem %s1395_s3, %s1110_s26 }
   0xe   : > { %459 = vmatpush.bf16.msra.mxu2 %v1136_v2  ;;  %479 = vst [vmem:[#allocation3] sm:$0xf] %v1189_v3  ;;  %v1253_v10 = vld [vmem:[%s165_s29] sm:$0xff]  ;;  %v1255_v11 = vld [vmem:[%s165_s29 + $0x8] sm:$0xff]  ;;  %v1123_v18 = vld [vmem:[%s1393_s1 + $0x58] sm:$0xff] }
   0xf   : > { %480 = vst [vmem:[#allocation3 + $0xc] sm:$0xf] %v1189_v3  ;;  %v174_v12 = vpack.c.bf16 %v1253_v10, %v1253_v10  ;;  %v175_v13 = vpack.c.bf16 %v1255_v11, %v1255_v11  ;;  %v1124_v14 = vld [vmem:[%s1393_s1 + $0x60] sm:$0xff]  ;;  %v1115_v19 = vld [vmem:[%s1393_s1 + $0x18] sm:$0xff]  ;;  %v1122_v23 = vld [vmem:[%s1393_s1 + $0x50] sm:$0xff] }
  0x10   : > { %271 = vmatpush.bf16.msra.mxu0 %v1126_v4  ;;  %v1116_v15 = vld [vmem:[%s1393_s1 + $0x20] sm:$0xff]  ;;  %v1132_v20 = vld [vmem:[%s1393_s1 + $0x98] sm:$0xff]  ;;  %v1114_v24 = vld [vmem:[%s1393_s1 + $0x10] sm:$0xff]  ;;  %vm288_vm0 = vsmask.f32 4352 }
  0x11   : > { %356 = vmatpush.bf16.msra.mxu1 %v1118_v5  ;;  %v1133_v16 = vld [vmem:[%s1393_s1 + $0xa0] sm:$0xff]  ;;  %178 = vst [vmem:[#allocation2 + $0x4] sm:$0xf] %v174_v12  ;;  %v1131_v25 = vld [vmem:[%s1393_s1 + $0x90] sm:$0xff]  ;;  %v1121_v32 = vld [vmem:[%s1393_s1 + $0x48] sm:$0xff] }
  0x12   : > { %460 = vmatpush.bf16.msra.mxu2 %v1135_v6  ;;  %179 = vst [vmem:[#allocation2 + $0x8] sm:$0xf] %v175_v13  ;;  %v1113_v33 = vld [vmem:[%s1393_s1 + $0x8] sm:$0xff]  ;;  %v1120_v44 = vld [vmem:[%s1393_s1 + $0x40] sm:$0xff]  ;;  %vm397_vm1 = vsmask.f32 7424 }
  0x13   : > { %v1181_v21 = vld [vmem:[#allocation2] sm:$0x8]  ;;  %v1130_v36 = vld [vmem:[%s1393_s1 + $0x88] sm:$0xff]  ;;  %v1152_v57 = vld [vmem:[%s1394_s2 + $0x78] sm:$0xff] }
  0x14   : > { %272 = vmatpush.bf16.msra.mxu0 %v1125_v7  ;;  %v371_v17 = vld [vmem:[#allocation2 + $0xc] sm:$0x1]  ;;  %v1112_v45 = vld [vmem:[%s1393_s1] sm:$0xff]  ;;  %573 = vmatpush.bf16.msra.mxu3 %v1152_v57  ;;  %v1151_v58 = vld [vmem:[%s1394_s2 + $0x70] sm:$0xff] }
  0x15   : > { %357 = vmatpush.bf16.msra.mxu1 %v1117_v8  ;;  %v394_v22 = vunpack.c.l.b16 %v371_v17  ;;  %v1129_v50 = vld [vmem:[%s1393_s1 + $0x80] sm:$0xff]  ;;  %v1161_v59 = vld [vmem:[%s1394_s2 + $0xb8] sm:$0xff]  ;;  %v1150_v61 = vld [vmem:[%s1394_s2 + $0x68] sm:$0xff] }
  0x16   : > { %461 = vmatpush.bf16.msra.mxu2 %v1134_v9  ;;  %v1144_v60 = vld [vmem:[%s1394_s2 + $0x38] sm:$0xff]  ;;  %v1160_v62 = vld [vmem:[%s1394_s2 + $0xb0] sm:$0xff]  ;;  %v1149_v0 = vld [vmem:[%s1394_s2 + $0x60] sm:$0xff] }
  0x17   : > { %v396_v29 = vpack.c.b16 %v394_v22, %v394_v22  ;;  %v1143_v63 = vld [vmem:[%s1394_s2 + $0x30] sm:$0xff]  ;;  %v1159_v1 = vld [vmem:[%s1394_s2 + $0xa8] sm:$0xff]  ;;  %v1148_v3 = vld [vmem:[%s1394_s2 + $0x58] sm:$0xff] }
  0x18   : > { %273 = vmatpush.bf16.msra.mxu0 %v1124_v14  ;;  %v1184_v27 = vld [vmem:[#allocation2] sm:$0xf0]   ;;  %574 = vmatpush.bf16.msra.mxu3 %v1151_v58  ;;  %v1142_v2 = vld [vmem:[%s1394_s2 + $0x28] sm:$0xff]  ;;  %v1147_v6 = vld [vmem:[%s1394_s2 + $0x50] sm:$0xff] }
  0x19   : > { %358 = vmatpush.bf16.msra.mxu1 %v1116_v15  ;;  %v181_v26 = vld [vmem:[#allocation2 + $0x4] sm:$0xff]   ;;  %v1182_v34 = vor.u32 %v1184_v27, %v1181_v21  ;;  %v406_v39 = vshll.u32 %v396_v29, 16  ;;  %v1157_v7 = vld [vmem:[%s1394_s2 + $0x98] sm:$0xff]  ;;  %v1156_v12 = vld [vmem:[%s1394_s2 + $0x90] sm:$0xff] }
  0x1a   : > { %462 = vmatpush.bf16.msra.mxu2 %v1133_v16  ;;  %v1128_v28 = vld [vmem:[#allocation2 + $0x4] sm:$0xff]  ;;  %v219_v30 = vunpack.c.h.b16 %v181_v26  ;;  %v1140_v8 = vld [vmem:[%s1394_s2 + $0x18] sm:$0xff]  ;;  %v1139_v13 = vld [vmem:[%s1394_s2 + $0x10] sm:$0xff] }
  0x1b   : > { %v401_v31 = vshll.u32 %v1128_v28, 16  ;;  %v399_v37 = vshrl.u32 %v1128_v28, 16  ;;  %v290_v40 = vshrl.u32 %v1182_v34, 16  ;;  %v293_v41 = vshll.u32 %v1182_v34, 16  ;;  %v1158_v4 = vld [vmem:[%s1394_s2 + $0xa0] sm:$0xff]  ;;  %v1146_v9 = vld [vmem:[%s1394_s2 + $0x48] sm:$0xff] }
  0x1c   : > { %274 = vmatpush.bf16.msra.mxu0 %v1123_v18  ;;  %v287_v35 = vpack.c.b16 %v219_v30, %v219_v30  ;;  %v408_v52 = vrot.slane %v406_v39, 1  ;;  %575 = vmatpush.bf16.msra.mxu3 %v1150_v61  ;;  %v1141_v5 = vld [vmem:[%s1394_s2 + $0x20] sm:$0xff]  ;;  %v1155_v15 = vld [vmem:[%s1394_s2 + $0x88] sm:$0xff] }
  0x1d   : > { %359 = vmatpush.bf16.msra.mxu1 %v1115_v19  ;;  %v403_v38 = vrot.slane %v401_v31, 1  ;;  %v292_v46 = vrot.slane %v290_v40, 3  ;;  %v295_v47 = vrot.slane %v293_v41, 4  ;;  %v1145_v14 = vld [vmem:[%s1394_s2 + $0x40] sm:$0xff]  ;;  %v1138_v16 = vld [vmem:[%s1394_s2 + $0x8] sm:$0xff] }
  0x1e   : > { %463 = vmatpush.bf16.msra.mxu2 %v1132_v20  ;;  %v298_v42 = vshrl.u32 %v287_v35, 16  ;;  %v301_v43 = vshll.u32 %v287_v35, 16  ;;  %v1154_v19 = vld [vmem:[%s1394_s2 + $0x80] sm:$0xff]  ;;  %v1173_v35 = vld [vmem:[#allocation3] sm:$0x8] }
  0x1f   : > { %v404_v51 = vor.u32 %v403_v38, %v399_v37  ;;  %v296_v53 = vor.u32 %v295_v47, %v292_v46  ;;  %v1137_v21 = vld [vmem:[%s1394_s2] sm:$0xff] }
  0x20   : > { %275 = vmatpush.bf16.msra.mxu0 %v1122_v23  ;;  %v300_v48 = vrot.slane %v298_v42, 3  ;;  %v303_v49 = vrot.slane %v301_v43, 4  ;;  %576 = vmatpush.bf16.msra.mxu3 %v1149_v0 }
  0x21   : > { %360 = vmatpush.bf16.msra.mxu1 %v1114_v24  ;;  %v409_v56 = vsel %vm397_vm1, %v404_v51, %v408_v52 }
  0x22   : > { %464 = vmatpush.bf16.msra.mxu2 %v1131_v25  ;;  %v304_v54 = vor.u32 %v303_v49, %v300_v48 }
  0x24   : > { %276 = vmatpush.bf16.msra.mxu0 %v1121_v32  ;;  %v305_v55 = vsel %vm288_vm0, %v296_v53, %v304_v54  ;;  %577 = vmatpush.bf16.msra.mxu3 %v1148_v3  ;;  %v673_v32 = vld [vmem:[#allocation3 + $0xc] sm:$0x1] }
  0x25   : > { %361 = vmatpush.bf16.msra.mxu1 %v1113_v33  ;;  %v696_v34 = vunpack.c.l.b16 %v673_v32 }
  0x26   : > { %465 = vmatpush.bf16.msra.mxu2 %v1130_v36 }
  0x27   : > { %v698_v36 = vpack.c.b16 %v696_v34, %v696_v34 }
  0x28   : > { %277 = vmatpush.bf16.msra.mxu0 %v1120_v44  ;;  %578 = vmatpush.bf16.msra.mxu3 %v1147_v6 }
  0x29   : > { %362 = vmatpush.bf16.msra.mxu1 %v1112_v45  ;;  %v707_v40 = vshll.u32 %v698_v36, 16 }
  0x2a   : > { %466 = vmatpush.bf16.msra.mxu2 %v1129_v50 }
  0x2b   : > { %278 = vmatmul.bf16.vlgmr.msra.gmra.mxu0 %v181_v26  ;;  %v709_v47 = vrot.slane %v707_v40, 1 }
  0x2c   : > { %363 = vmatmul.bf16.vlgmr.msra.gmra.mxu1 %v305_v55  ;;  %657 = vmatpush.bf16.msrb.mxu0 %v1144_v60 }
  0x2d   : > { %467 = vmatmul.bf16.vlgmr.msra.gmra.mxu2 %v409_v56  ;;  %760 = vmatpush.bf16.msrb.mxu1 %v1161_v59 }
  0x2e   : > { %579 = vmatpush.bf16.msra.mxu3 %v1146_v9 }
  0x30   : > { %658 = vmatpush.bf16.msrb.mxu0 %v1143_v63 }
  0x31   : > { %761 = vmatpush.bf16.msrb.mxu1 %v1160_v62 }
  0x32   : > { %580 = vmatpush.bf16.msra.mxu3 %v1145_v14 }
  0x34   : > { %659 = vmatpush.bf16.msrb.mxu0 %v1142_v2 }
  0x35   : > { %762 = vmatpush.bf16.msrb.mxu1 %v1159_v1 }
  0x38   : > { %660 = vmatpush.bf16.msrb.mxu0 %v1141_v5 }
  0x39   : > { %763 = vmatpush.bf16.msrb.mxu1 %v1158_v4 }
  0x3c   : > { %661 = vmatpush.bf16.msrb.mxu0 %v1140_v8 }
  0x3d   : > { %764 = vmatpush.bf16.msrb.mxu1 %v1157_v7 }
  0x40   : > { %662 = vmatpush.bf16.msrb.mxu0 %v1139_v13 }
  0x41   : > { %765 = vmatpush.bf16.msrb.mxu1 %v1156_v12 }
  0x44   : > { %663 = vmatpush.bf16.msrb.mxu0 %v1138_v16 }
  0x45   : > { %766 = vmatpush.bf16.msrb.mxu1 %v1155_v15 }
  0x48   : > { %664 = vmatpush.bf16.msrb.mxu0 %v1137_v21 }
  0x49   : > { %767 = vmatpush.bf16.msrb.mxu1 %v1154_v19 }
  0xa8   : > { %v279_v17 = vpop.f32.mrf.mxu0 }
  0xa9   : > { %v364_v18 = vpop.f32.mrf.mxu1 }
  0xaa   : > { %v365_v20 = vadd.f32 %v364_v18, %v279_v17 }
  0xb0   : > { %v468_v22 = vpop.f32.mrf.mxu2  ;;  %v281_v25 = vpop.f32.mrf.mxu0 }
  0xb1   : > { %v473_v23 = vadd.f32 %v468_v22, %v365_v20  ;;  %v366_v26 = vpop.f32.mrf.mxu1 }
  0xb2   : > { %v367_v28 = vadd.f32 %v366_v26, %v281_v25 }
  0xb3   : > { %v475_v24 = vmax.f32 %v473_v23, 0.0 }
  0xb5   : > { %v477_v27 = vpack.c.bf16 %v475_v24, %v475_v24 }
  0xb7   : > { %481 = vst [vmem:[#allocation3 + $0x4] sm:$0xf] %v477_v27 }
  0xb8   : > { %v470_v29 = vpop.f32.mrf.mxu2 }
  0xb9   : > { %v474_v30 = vadd.f32 %v470_v29, %v367_v28 }
  0xbb   : > { %v476_v31 = vmax.f32 %v474_v30, 0.0 }
  0xbd   : > { %v478_v33 = vpack.c.bf16 %v476_v31, %v476_v31 }
  0xbe   : > { %v1183_v38 = vld [vmem:[#allocation3] sm:$0xf0]  }
  0xbf   : > { %482 = vst [vmem:[#allocation3 + $0x8] sm:$0xf] %v478_v33  ;;  %v1174_v43 = vor.u32 %v1183_v38, %v1173_v35 }
  0xc1   : > { %v592_v48 = vshrl.u32 %v1174_v43, 16  ;;  %v595_v49 = vshll.u32 %v1174_v43, 16 }
  0xc3   : > { %v594_v53 = vrot.slane %v592_v48, 3  ;;  %v597_v54 = vrot.slane %v595_v49, 4 }
  0xc5   : > { %v598_v58 = vor.u32 %v597_v54, %v594_v53 }
  0xc6   : > { %v484_v37 = vld [vmem:[#allocation3 + $0x4] sm:$0xff]  }
  0xc7   : > { %v1153_v39 = vld [vmem:[#allocation3 + $0x4] sm:$0xff]  ;;  %v522_v41 = vunpack.c.h.b16 %v484_v37  ;;  %581 = vmatmul.bf16.vlgmr.msra.gmra.mxu3 %v484_v37 }
  0xc8   : > { %v702_v42 = vshll.u32 %v1153_v39, 16  ;;  %v700_v45 = vshrl.u32 %v1153_v39, 16 }
  0xc9   : > { %v590_v44 = vpack.c.b16 %v522_v41, %v522_v41 }
  0xca   : > { %v704_v46 = vrot.slane %v702_v42, 1 }
  0xcb   : > { %v600_v50 = vshrl.u32 %v590_v44, 16  ;;  %v603_v51 = vshll.u32 %v590_v44, 16 }
  0xcc   : > { %v705_v52 = vor.u32 %v704_v46, %v700_v45 }
  0xcd   : > { %v602_v55 = vrot.slane %v600_v50, 3  ;;  %v605_v56 = vrot.slane %v603_v51, 4 }
  0xce   : > { %v710_v57 = vsel %vm397_vm1, %v705_v52, %v709_v47 }
  0xcf   : > { %768 = vmatmul.bf16.vlgmr.msrb.gmra.mxu1 %v710_v57  ;;  %v606_v59 = vor.u32 %v605_v56, %v602_v55 }
  0xd1   : > { %v607_v60 = vsel %vm288_vm0, %v598_v58, %v606_v59 }
  0xd2   : > { %665 = vmatmul.bf16.vlgmr.msrb.gmra.mxu0 %v607_v60 }
 0x14a   : > { %v582_v61 = vpop.f32.mrf.mxu3 }
 0x14c   : > { %v769_v62 = vpop.f32.mrf.mxu1 }
 0x14f   : > { %v666_v63 = vpop.f32.mrf.mxu0 }
 0x150   : > { %v667_v0 = vadd.f32 %v666_v63, %v582_v61 }
 0x152   : > { %v774_v1 = vadd.f32 %v769_v62, %v667_v0  ;;  %v584_v3 = vpop.f32.mrf.mxu3 }
 0x154   : > { %v776_v2 = vadd.f32 %v774_v1, %v1253_v10  ;;  %v771_v6 = vpop.f32.mrf.mxu1 }
 0x156   : > { %778 = vst [vmem:[%s170_s19] sm:$0xff] %v776_v2 }
 0x157   : > { %v668_v4 = vpop.f32.mrf.mxu0 }
 0x158   : > { %v669_v5 = vadd.f32 %v668_v4, %v584_v3 }
 0x15a   : > { %v775_v7 = vadd.f32 %v771_v6, %v669_v5 }
 0x15c   : > { %v777_v8 = vadd.f32 %v775_v7, %v1255_v11 }
 0x15e   : > { %779 = vst [vmem:[%s170_s19 + $0x8] sm:$0xff] %v777_v8 }
 0x15f PF: > { %s13_s12 = sadd.s32 1, %s1187_s12  }
 0x160   : > { %p10_p4 = scmp.ge.s32.totalorder %s13_s12, 4  }
 0x162   :  { %12 = sbr.rel (!%p10_p4) target bundleno = 1 (0x1), region = 66 }

</bundles_post_ra>
